<compile_context>
chip_gen: v7x
topology: tpu7x:2x2x1
jax: 0.10.0
libtpu: 0.0.40
codegen_flags: <defaults>
</compile_context>

<pallas_src>
import functools

import jax
import jax.numpy as jnp
from jax.experimental import pallas as pl
from jax.experimental.pallas import tpu as pltpu

ALPHA = 10.0      # PACT clipping level (freshly created Parameter(10.0))
BN_EPS = 1e-5


# ----------------------------------------------------------------------------
# Fused Pallas kernel: conv (MXU matmul or depthwise VPU taps)
#                      + (sub-spectral) affine + PACT
# ----------------------------------------------------------------------------
def _conv_norm_act_kernel(*refs, depthwise, kdim, nbands, act, qlevels, alpha):
    if nbands > 1:
        cols_ref, w_ref, s_ref, b_ref, oh_ref, o_ref = refs
    else:
        cols_ref, w_ref, s_ref, b_ref, o_ref = refs
        oh_ref = None

    if depthwise:
        # Depthwise conv: Kh*Kw VPU multiply-accumulates on per-channel taps,
        # no MXU and no block-diagonal weight.
        w = w_ref[...].astype(jnp.float32)                    # (C, K)
        y = w[:, 0:1] * cols_ref[0].astype(jnp.float32)       # (C, TM)
        for k in range(1, kdim):
            y = y + w[:, k:k + 1] * cols_ref[k].astype(jnp.float32)
    else:
        # Dense conv as one bf16 MXU matmul over the lane-dense column matrix.
        y = jnp.dot(w_ref[...], cols_ref[...],
                    preferred_element_type=jnp.float32)       # (Cout, TM)

    if nbands == 1:
        # BatchNorm / identity: per-channel affine broadcast over lanes.
        y = y * s_ref[...] + b_ref[...]
    else:
        # SubSpectralNorm: per-(channel, band) affine expanded by two tiny MXU
        # matmuls against a precomputed (nbands, TM) one-hot band matrix.
        sc = jnp.dot(s_ref[...], oh_ref[...], preferred_element_type=jnp.float32)
        sh = jnp.dot(b_ref[...], oh_ref[...], preferred_element_type=jnp.float32)
        y = y * sc + sh

    if act:
        # PACT: the (n/alpha) pre-scale is folded into the affine above;
        # clamp to [0, n], round, one rescale multiply.
        y = jnp.round(jnp.clip(y, 0.0, qlevels)) * (alpha / qlevels)

    o_ref[...] = y.astype(o_ref.dtype)


# ----------------------------------------------------------------------------
# Wrapper-side layout plumbing (done once per layer, at the boundary)
# ----------------------------------------------------------------------------
def _pick_m_tiles(m):
    """Pad M to a multiple of 128; TM always a multiple of 128, Mp % TM == 0."""
    mp = pl.cdiv(m, 128) * 128
    if mp <= 1024:
        # Small M: single block (1 TC on v5e/v6e; per-step overhead dominates).
        # Split 2-way only when both halves are 128-aligned and >=256 lanes,
        # so both v7x TensorCores get real work under "parallel".
        if mp >= 512 and mp % 256 == 0:
            return mp, mp // 2
        return mp, mp
    tm = 512
    mp = pl.cdiv(mp, tm) * tm
    return mp, tm


def _expand_grouped_weight(w, cin, groups):
    """(Cout, Cin/G, Kh, Kw) -> block-diagonal (Cout, Cin*Kh*Kw). Fallback only."""
    cout, cing, kh, kw = w.shape
    k = kh * kw
    if groups == 1:
        return w.reshape(cout, cin * k)
    coutg = cout // groups
    wf = jnp.zeros((cout, cin * k), w.dtype)
    for g in range(groups):
        blk = w[g * coutg:(g + 1) * coutg].reshape(coutg, cing * k)
        wf = wf.at[g * coutg:(g + 1) * coutg,
                   g * cing * k:(g + 1) * cing * k].set(blk)
    return wf


def conv_bn_act_cnhw(x, w, scale, shift, stride, padding, dilation, groups,
                     act, bitwidth):
    """Fused Conv2d (bias=False) + norm affine + optional PACT.

    x is in lane-dense (Cin, N, H, W) layout; returns (Cout, N, Ho, Wo).
    """
    cin, n, h, wd = x.shape
    cout, _, kh, kw = w.shape
    sh, sw = stride
    ph, pw = padding
    dh, dw = dilation
    ho = (h + 2 * ph - dh * (kh - 1) - 1) // sh + 1
    wo = (wd + 2 * pw - dw * (kw - 1) - 1) // sw + 1
    kdim = kh * kw
    m = n * ho * wo
    mp, tm = _pick_m_tiles(m)
    nbands = scale.shape[1]
    if nbands > 1:
        assert ho % nbands == 0, "SubSpectralNorm needs freq divisible by bands"
    depthwise = (groups == cin) and (groups == cout)
    qlevels = float(2 ** bitwidth - 1)

    # Fold the PACT pre-scale into the norm affine (saves one full-tile VPU mul).
    if act:
        scale = scale * (qlevels / ALPHA)
        shift = shift * (qlevels / ALPHA)

    # Tap extraction (wrapper-side), padded once to Mp, cast to bf16.
    # TODO(synk): for large inputs, DMA the padded input and extract taps
    # in-kernel to avoid the Kh*Kw x HBM replication of im2col.
    xp = jnp.pad(x, ((0, 0), (0, 0), (ph, ph), (pw, pw)))
    taps = [xp[:, :,
               i * dh: i * dh + sh * (ho - 1) + 1: sh,
               j * dw: j * dw + sw * (wo - 1) + 1: sw]
            for i in range(kh) for j in range(kw)]
    taps = jnp.stack(taps, 0)                       # (K, Cin, N, Ho, Wo)

    if depthwise:
        cols = taps.reshape(kdim, cin, m)
        cols = jnp.pad(cols, ((0, 0), (0, 0), (0, mp - m))).astype(jnp.bfloat16)
        wmat = w.reshape(cout, kdim).astype(jnp.bfloat16)
        cols_spec = pl.BlockSpec((kdim, cin, tm), lambda i: (0, 0, i))
        w_spec = pl.BlockSpec((cout, kdim), lambda i: (0, 0))
    else:
        cols = jnp.transpose(taps, (1, 0, 2, 3, 4)).reshape(cin * kdim, m)
        cols = jnp.pad(cols, ((0, 0), (0, mp - m))).astype(jnp.bfloat16)
        if groups == 1:
            wmat = w.reshape(cout, cin * kdim).astype(jnp.bfloat16)
        else:
            # TODO(synk): general grouped conv (1 < G < Cin) falls back to a
            # block-diagonal weight; BCResNet only uses dense or depthwise.
            wmat = _expand_grouped_weight(w, cin, groups).astype(jnp.bfloat16)
        ck = cin * kdim
        cols_spec = pl.BlockSpec((ck, tm), lambda i: (0, i))
        w_spec = pl.BlockSpec((cout, ck), lambda i: (0, 0))

    inputs = [cols, wmat, scale, shift]
    in_specs = [cols_spec, w_spec,
                pl.BlockSpec((cout, nbands), lambda i: (0, 0)),
                pl.BlockSpec((cout, nbands), lambda i: (0, 0))]

    if nbands > 1:
        # One-hot band matrix (nbands, Mp); band = freq_row // (Ho / nbands).
        m_idx = jnp.arange(mp)
        band = ((m_idx % (ho * wo)) // wo) // (ho // nbands)
        onehot = (band[None, :] == jnp.arange(nbands)[:, None]).astype(jnp.float32)
        inputs.append(onehot)
        in_specs.append(pl.BlockSpec((nbands, tm), lambda i: (0, i)))

    kernel = functools.partial(
        _conv_norm_act_kernel, depthwise=depthwise, kdim=kdim, nbands=nbands,
        act=act, qlevels=qlevels, alpha=ALPHA)

    out = pl.pallas_call(
        kernel,
        out_shape=jax.ShapeDtypeStruct((cout, mp), jnp.float32),
        grid=(mp // tm,),
        in_specs=in_specs,
        out_specs=pl.BlockSpec((cout, tm), lambda i: (0, i)),
        compiler_params=pltpu.CompilerParams(
            dimension_semantics=("parallel",)),
    )(*inputs)

    return out[:, :m].reshape(cout, n, ho, wo)


# ----------------------------------------------------------------------------
# ConvBNReLU module (mirrors the PyTorch __init__ / forward semantics)
# ----------------------------------------------------------------------------
class ConvBNReLU:
    def __init__(self, key, in_plane, out_plane, idx, bitwidth, kernel_size=3,
                 stride=1, groups=1, use_dilation=False, activation=True,
                 BN=True, ssn=False):
        self.idx = idx
        self.bitwidth = bitwidth
        self.act = bool(activation)
        self.groups = groups

        def get_padding(k):
            rate = 1
            pad = (k - 1) // 2
            if use_dilation and k > 1:
                rate = int(2 ** idx)
                pad = rate * pad
            return pad, rate

        if isinstance(kernel_size, (list, tuple)):
            kh, kw = kernel_size
        else:
            kh = kw = kernel_size
        ph, rh = get_padding(kh)
        pw, rw = get_padding(kw)
        self.padding = (ph, pw)
        self.dilation = (rh, rw)
        self.stride = tuple(stride) if isinstance(stride, (list, tuple)) \
            else (stride, stride)

        # Conv2d weight, Kaiming-normal (fan_in, relu gain), bias=False.
        cing = in_plane // groups
        fan_in = cing * kh * kw
        self.w = (2.0 / fan_in) ** 0.5 * jax.random.normal(
            key, (out_plane, cing, kh, kw), jnp.float32)

        # Norm folded to per-(channel, band) affine. Fresh inference stats:
        # gamma=1, beta=0, running_mean=0, running_var=1.
        nb = 5 if ssn else 1
        if ssn or BN:
            gamma = jnp.ones((out_plane, nb), jnp.float32)
            beta = jnp.zeros((out_plane, nb), jnp.float32)
            rmean = jnp.zeros((out_plane, nb), jnp.float32)
            rvar = jnp.ones((out_plane, nb), jnp.float32)
            self.scale = gamma / jnp.sqrt(rvar + BN_EPS)
            self.shift = beta - rmean * self.scale
        else:
            self.scale = jnp.ones((out_plane, 1), jnp.float32)
            self.shift = jnp.zeros((out_plane, 1), jnp.float32)

    def call_cnhw(self, x_cnhw):
        """Lane-dense (C, N, H, W) in / (Cout, N, Ho, Wo) out (for chaining)."""
        return conv_bn_act_cnhw(x_cnhw, self.w, self.scale, self.shift,
                                self.stride, self.padding, self.dilation,
                                self.groups, self.act, self.bitwidth)

    def __call__(self, x_nchw):
        """Standalone NCHW interface, matching the PyTorch module."""
        y = self.call_cnhw(jnp.transpose(x_nchw, (1, 0, 2, 3)))
        return jnp.transpose(y, (1, 0, 2, 3))


# ----------------------------------------------------------------------------
if __name__ == "__main__":
    key = jax.random.PRNGKey(0)
    k0, k1, k2, k3 = jax.random.split(key, 4)

    # Representative ConvBNReLU instances, exactly as used inside BCResNet:
    #   1) standard conv + BN + PACT  (groups=1, stride (2,1))
    #   2) depthwise frequency conv + SubSpectralNorm, no activation
    #   3) dilated depthwise time conv + BN + PACT
    layer1 = ConvBNReLU(k1, 8, 16, idx=0, bitwidth=4, kernel_size=5,
                        stride=(2, 1), groups=1, BN=True, activation=True)
    layer2 = ConvBNReLU(k2, 16, 16, idx=1, bitwidth=4, kernel_size=(3, 1),
                        stride=1, groups=16, ssn=True, activation=False)
    layer3 = ConvBNReLU(k3, 16, 16, idx=2, bitwidth=4, kernel_size=(1, 3),
                        stride=1, groups=16, use_dilation=True, BN=True,
                        activation=True)

    # (batch, channels, freq, time) — freq=40 so stride-2 gives 20, which the
    # 5 sub-spectral bands divide exactly.
    x = jax.random.normal(k0, (2, 8, 40, 8), jnp.float32)

    @jax.jit
    def forward(inp):
        # Chain layers in the lane-dense (C, N, H, W) layout; transpose
        # to/from NCHW exactly once at the network boundary.
        y = jnp.transpose(inp, (1, 0, 2, 3))
        y = layer1.call_cnhw(y)     # (16, 2, 20, 8)
        y = layer2.call_cnhw(y)     # (16, 2, 20, 8)
        y = layer3.call_cnhw(y)     # (16, 2, 20, 8)
        return jnp.transpose(y, (1, 0, 2, 3))

    out = jax.block_until_ready(forward(x))
    assert out.shape == (2, 16, 20, 8), out.shape
    assert bool(jnp.all(jnp.isfinite(out)))
    print("KERNEL_OK")
</pallas_src>

<mosaic_0001>
module attributes {stable_mosaic.version = 11 : i64} {
  func.func @_conv_norm_act_kernel(%arg0: i32, %arg1: memref<200x384xbf16, #tpu.memory_space<vmem>>, %arg2: memref<16x200xbf16, #tpu.memory_space<vmem>>, %arg3: memref<16x1xf32, #tpu.memory_space<vmem>>, %arg4: memref<16x1xf32, #tpu.memory_space<vmem>>, %arg5: memref<16x384xf32, #tpu.memory_space<vmem>>) attributes {dimension_semantics = [#tpu.dimension_semantics<parallel>], iteration_bounds = array<i64: 1>, scalar_prefetch = 0 : i64, scratch_operands = 0 : i64, tpu.core_type = #tpu.core_type<tc>, window_params = [{transform_indices = @transform_0, window_bounds = array<i64: 200, 384>}, {pipeline_mode = #tpu.pipeline_mode<synchronous>, transform_indices = @transform_1, window_bounds = array<i64: 16, 200>}, {pipeline_mode = #tpu.pipeline_mode<synchronous>, transform_indices = @transform_2, window_bounds = array<i64: 16, 1>}, {pipeline_mode = #tpu.pipeline_mode<synchronous>, transform_indices = @transform_3, window_bounds = array<i64: 16, 1>}, {transform_indices = @transform_4, window_bounds = array<i64: 16, 384>}]} {
    %c0 = arith.constant 0 : index
    %c0_0 = arith.constant 0 : index
    %0 = vector.load %arg2[%c0, %c0_0] : memref<16x200xbf16, #tpu.memory_space<vmem>>, vector<16x200xbf16>
    %c0_1 = arith.constant 0 : index
    %c0_2 = arith.constant 0 : index
    %1 = vector.load %arg1[%c0_1, %c0_2] : memref<200x384xbf16, #tpu.memory_space<vmem>>, vector<200x384xbf16>
    %cst = arith.constant dense<0.000000e+00> : vector<16x384xf32>
    %2 = tpu.matmul %0, %1, %cst {dimension_numbers = #tpu.dot_dimension_numbers<[1], [0], [0], [1], [0, 0, 1, 1], [], []>} : vector<16x200xbf16>, vector<200x384xbf16>, vector<16x384xf32> -> vector<16x384xf32>
    %c0_3 = arith.constant 0 : index
    %c0_4 = arith.constant 0 : index
    %3 = vector.load %arg3[%c0_3, %c0_4] : memref<16x1xf32, #tpu.memory_space<vmem>>, vector<16x1xf32>
    %4 = vector.broadcast %3 : vector<16x1xf32> to vector<16x384xf32>
    %5 = arith.mulf %2, %4 : vector<16x384xf32>
    %c0_5 = arith.constant 0 : index
    %c0_6 = arith.constant 0 : index
    %6 = vector.load %arg4[%c0_5, %c0_6] : memref<16x1xf32, #tpu.memory_space<vmem>>, vector<16x1xf32>
    %7 = vector.broadcast %6 : vector<16x1xf32> to vector<16x384xf32>
    %8 = arith.addf %5, %7 : vector<16x384xf32>
    %cst_7 = arith.constant 0.000000e+00 : f32
    %cst_8 = arith.constant 1.500000e+01 : f32
    %9 = vector.broadcast %cst_7 : f32 to vector<16x384xf32>
    %10 = arith.maximumf %9, %8 : vector<16x384xf32>
    %11 = vector.broadcast %cst_8 : f32 to vector<16x384xf32>
    %12 = arith.minimumf %11, %10 : vector<16x384xf32>
    %13 = math.roundeven %12 : vector<16x384xf32>
    %cst_9 = arith.constant 0.666666686 : f32
    %14 = vector.broadcast %cst_9 : f32 to vector<16x384xf32>
    %15 = arith.mulf %13, %14 : vector<16x384xf32>
    %c0_10 = arith.constant 0 : index
    %c0_11 = arith.constant 0 : index
    %16 = vector.load %arg5[%c0_10, %c0_11] : memref<16x384xf32, #tpu.memory_space<vmem>>, vector<16x384xf32>
    tpu.vector_store %arg5[%c0_10, %c0_11], %15 {strides = array<i32>} : memref<16x384xf32, #tpu.memory_space<vmem>>, vector<16x384xf32>,
    return
  }
  func.func @transform_0(%arg0: i32) -> (i32, i32) {
    %c0_i32 = arith.constant 0 : i32
    %c0_i32_0 = arith.constant 0 : i32
    return %c0_i32, %arg0 : i32, i32
  }
  func.func @transform_1(%arg0: i32) -> (i32, i32) {
    %c0_i32 = arith.constant 0 : i32
    %c0_i32_0 = arith.constant 0 : i32
    %c0_i32_1 = arith.constant 0 : i32
    return %c0_i32, %c0_i32_0 : i32, i32
  }
  func.func @transform_2(%arg0: i32) -> (i32, i32) {
    %c0_i32 = arith.constant 0 : i32
    %c0_i32_0 = arith.constant 0 : i32
    %c0_i32_1 = arith.constant 0 : i32
    return %c0_i32, %c0_i32_0 : i32, i32
  }
  func.func @transform_3(%arg0: i32) -> (i32, i32) {
    %c0_i32 = arith.constant 0 : i32
    %c0_i32_0 = arith.constant 0 : i32
    %c0_i32_1 = arith.constant 0 : i32
    return %c0_i32, %c0_i32_0 : i32, i32
  }
  func.func @transform_4(%arg0: i32) -> (i32, i32) {
    %c0_i32 = arith.constant 0 : i32
    %c0_i32_0 = arith.constant 0 : i32
    return %c0_i32, %arg0 : i32, i32
  }
}

module attributes {stable_mosaic.version = 11 : i64} {
  func.func @_conv_norm_act_kernel(%arg0: i32, %arg1: memref<3x16x384xbf16, #tpu.memory_space<vmem>>, %arg2: memref<16x3xbf16, #tpu.memory_space<vmem>>, %arg3: memref<16x5xf32, #tpu.memory_space<vmem>>, %arg4: memref<16x5xf32, #tpu.memory_space<vmem>>, %arg5: memref<5x384xf32, #tpu.memory_space<vmem>>, %arg6: memref<16x384xf32, #tpu.memory_space<vmem>>) attributes {dimension_semantics = [#tpu.dimension_semantics<parallel>], iteration_bounds = array<i64: 1>, scalar_prefetch = 0 : i64, scratch_operands = 0 : i64, tpu.core_type = #tpu.core_type<tc>, window_params = [{transform_indices = @transform_0, window_bounds = array<i64: 3, 16, 384>}, {pipeline_mode = #tpu.pipeline_mode<synchronous>, transform_indices = @transform_1, window_bounds = array<i64: 16, 3>}, {pipeline_mode = #tpu.pipeline_mode<synchronous>, transform_indices = @transform_2, window_bounds = array<i64: 16, 5>}, {pipeline_mode = #tpu.pipeline_mode<synchronous>, transform_indices = @transform_3, window_bounds = array<i64: 16, 5>}, {transform_indices = @transform_4, window_bounds = array<i64: 5, 384>}, {transform_indices = @transform_5, window_bounds = array<i64: 16, 384>}]} {
    %c0 = arith.constant 0 : index
    %c0_0 = arith.constant 0 : index
    %0 = vector.load %arg2[%c0, %c0_0] : memref<16x3xbf16, #tpu.memory_space<vmem>>, vector<16x3xbf16>
    %1 = arith.extf %0 : vector<16x3xbf16> to vector<16x3xf32>
    %2 = vector.extract_strided_slice %1 {offsets = [0, 0], sizes = [16, 1], strides = [1, 1]} : vector<16x3xf32> to vector<16x1xf32>
    %c0_1 = arith.constant 0 : index
    %c0_2 = arith.constant 0 : index
    %c0_3 = arith.constant 0 : index
    %3 = vector.load %arg1[%c0_1, %c0_2, %c0_3] : memref<3x16x384xbf16, #tpu.memory_space<vmem>>, vector<1x16x384xbf16>
    %4 = vector.shape_cast %3 : vector<1x16x384xbf16> to vector<16x384xbf16>
    %5 = arith.extf %4 : vector<16x384xbf16> to vector<16x384xf32>
    %6 = vector.broadcast %2 : vector<16x1xf32> to vector<16x384xf32>
    %7 = arith.mulf %6, %5 : vector<16x384xf32>
    %8 = vector.extract_strided_slice %1 {offsets = [0, 1], sizes = [16, 1], strides = [1, 1]} : vector<16x3xf32> to vector<16x1xf32>
    %c1 = arith.constant 1 : index
    %c0_4 = arith.constant 0 : index
    %c0_5 = arith.constant 0 : index
    %9 = vector.load %arg1[%c1, %c0_4, %c0_5] : memref<3x16x384xbf16, #tpu.memory_space<vmem>>, vector<1x16x384xbf16>
    %10 = vector.shape_cast %9 : vector<1x16x384xbf16> to vector<16x384xbf16>
    %11 = arith.extf %10 : vector<16x384xbf16> to vector<16x384xf32>
    %12 = vector.broadcast %8 : vector<16x1xf32> to vector<16x384xf32>
    %13 = arith.mulf %12, %11 : vector<16x384xf32>
    %14 = arith.addf %7, %13 : vector<16x384xf32>
    %15 = vector.extract_strided_slice %1 {offsets = [0, 2], sizes = [16, 1], strides = [1, 1]} : vector<16x3xf32> to vector<16x1xf32>
    %c2 = arith.constant 2 : index
    %c0_6 = arith.constant 0 : index
    %c0_7 = arith.constant 0 : index
    %16 = vector.load %arg1[%c2, %c0_6, %c0_7] : memref<3x16x384xbf16, #tpu.memory_space<vmem>>, vector<1x16x384xbf16>
    %17 = vector.shape_cast %16 : vector<1x16x384xbf16> to vector<16x384xbf16>
    %18 = arith.extf %17 : vector<16x384xbf16> to vector<16x384xf32>
    %19 = vector.broadcast %15 : vector<16x1xf32> to vector<16x384xf32>
    %20 = arith.mulf %19, %18 : vector<16x384xf32>
    %21 = arith.addf %14, %20 : vector<16x384xf32>
    %c0_8 = arith.constant 0 : index
    %c0_9 = arith.constant 0 : index
    %22 = vector.load %arg3[%c0_8, %c0_9] : memref<16x5xf32, #tpu.memory_space<vmem>>, vector<16x5xf32>
    %c0_10 = arith.constant 0 : index
    %c0_11 = arith.constant 0 : index
    %23 = vector.load %arg5[%c0_10, %c0_11] : memref<5x384xf32, #tpu.memory_space<vmem>>, vector<5x384xf32>
    %cst = arith.constant dense<0.000000e+00> : vector<16x384xf32>
    %24 = tpu.matmul %22, %23, %cst {dimension_numbers = #tpu.dot_dimension_numbers<[1], [0], [0], [1], [0, 0, 1, 1], [], []>} : vector<16x5xf32>, vector<5x384xf32>, vector<16x384xf32> -> vector<16x384xf32>
    %c0_12 = arith.constant 0 : index
    %c0_13 = arith.constant 0 : index
    %25 = vector.load %arg4[%c0_12, %c0_13] : memref<16x5xf32, #tpu.memory_space<vmem>>, vector<16x5xf32>
    %c0_14 = arith.constant 0 : index
    %c0_15 = arith.constant 0 : index
    %26 = vector.load %arg5[%c0_14, %c0_15] : memref<5x384xf32, #tpu.memory_space<vmem>>, vector<5x384xf32>
    %cst_16 = arith.constant dense<0.000000e+00> : vector<16x384xf32>
    %27 = tpu.matmul %25, %26, %cst_16 {dimension_numbers = #tpu.dot_dimension_numbers<[1], [0], [0], [1], [0, 0, 1, 1], [], []>} : vector<16x5xf32>, vector<5x384xf32>, vector<16x384xf32> -> vector<16x384xf32>
    %28 = arith.mulf %21, %24 : vector<16x384xf32>
    %29 = arith.addf %28, %27 : vector<16x384xf32>
    %c0_17 = arith.constant 0 : index
    %c0_18 = arith.constant 0 : index
    %30 = vector.load %arg6[%c0_17, %c0_18] : memref<16x384xf32, #tpu.memory_space<vmem>>, vector<16x384xf32>
    tpu.vector_store %arg6[%c0_17, %c0_18], %29 {strides = array<i32>} : memref<16x384xf32, #tpu.memory_space<vmem>>, vector<16x384xf32>,
    return
  }
  func.func @transform_0(%arg0: i32) -> (i32, i32, i32) {
    %c0_i32 = arith.constant 0 : i32
    %c0_i32_0 = arith.constant 0 : i32
    %c0_i32_1 = arith.constant 0 : i32
    return %c0_i32, %c0_i32_0, %arg0 : i32, i32, i32
  }
  func.func @transform_1(%arg0: i32) -> (i32, i32) {
    %c0_i32 = arith.constant 0 : i32
    %c0_i32_0 = arith.constant 0 : i32
    %c0_i32_1 = arith.constant 0 : i32
    return %c0_i32, %c0_i32_0 : i32, i32
  }
  func.func @transform_2(%arg0: i32) -> (i32, i32) {
    %c0_i32 = arith.constant 0 : i32
    %c0_i32_0 = arith.constant 0 : i32
    %c0_i32_1 = arith.constant 0 : i32
    return %c0_i32, %c0_i32_0 : i32, i32
  }
  func.func @transform_3(%arg0: i32) -> (i32, i32) {
    %c0_i32 = arith.constant 0 : i32
    %c0_i32_0 = arith.constant 0 : i32
    %c0_i32_1 = arith.constant 0 : i32
    return %c0_i32, %c0_i32_0 : i32, i32
  }
  func.func @transform_4(%arg0: i32) -> (i32, i32) {
    %c0_i32 = arith.constant 0 : i32
    %c0_i32_0 = arith.constant 0 : i32
    return %c0_i32, %arg0 : i32, i32
  }
  func.func @transform_5(%arg0: i32) -> (i32, i32) {
    %c0_i32 = arith.constant 0 : i32
    %c0_i32_0 = arith.constant 0 : i32
    return %c0_i32, %arg0 : i32, i32
  }
}

module attributes {stable_mosaic.version = 11 : i64} {
  func.func @_conv_norm_act_kernel(%arg0: i32, %arg1: memref<3x16x384xbf16, #tpu.memory_space<vmem>>, %arg2: memref<16x3xbf16, #tpu.memory_space<vmem>>, %arg3: memref<16x1xf32, #tpu.memory_space<vmem>>, %arg4: memref<16x1xf32, #tpu.memory_space<vmem>>, %arg5: memref<16x384xf32, #tpu.memory_space<vmem>>) attributes {dimension_semantics = [#tpu.dimension_semantics<parallel>], iteration_bounds = array<i64: 1>, scalar_prefetch = 0 : i64, scratch_operands = 0 : i64, tpu.core_type = #tpu.core_type<tc>, window_params = [{transform_indices = @transform_0, window_bounds = array<i64: 3, 16, 384>}, {pipeline_mode = #tpu.pipeline_mode<synchronous>, transform_indices = @transform_1, window_bounds = array<i64: 16, 3>}, {pipeline_mode = #tpu.pipeline_mode<synchronous>, transform_indices = @transform_2, window_bounds = array<i64: 16, 1>}, {pipeline_mode = #tpu.pipeline_mode<synchronous>, transform_indices = @transform_3, window_bounds = array<i64: 16, 1>}, {transform_indices = @transform_4, window_bounds = array<i64: 16, 384>}]} {
    %c0 = arith.constant 0 : index
    %c0_0 = arith.constant 0 : index
    %0 = vector.load %arg2[%c0, %c0_0] : memref<16x3xbf16, #tpu.memory_space<vmem>>, vector<16x3xbf16>
    %1 = arith.extf %0 : vector<16x3xbf16> to vector<16x3xf32>
    %2 = vector.extract_strided_slice %1 {offsets = [0, 0], sizes = [16, 1], strides = [1, 1]} : vector<16x3xf32> to vector<16x1xf32>
    %c0_1 = arith.constant 0 : index
    %c0_2 = arith.constant 0 : index
    %c0_3 = arith.constant 0 : index
    %3 = vector.load %arg1[%c0_1, %c0_2, %c0_3] : memref<3x16x384xbf16, #tpu.memory_space<vmem>>, vector<1x16x384xbf16>
    %4 = vector.shape_cast %3 : vector<1x16x384xbf16> to vector<16x384xbf16>
    %5 = arith.extf %4 : vector<16x384xbf16> to vector<16x384xf32>
    %6 = vector.broadcast %2 : vector<16x1xf32> to vector<16x384xf32>
    %7 = arith.mulf %6, %5 : vector<16x384xf32>
    %8 = vector.extract_strided_slice %1 {offsets = [0, 1], sizes = [16, 1], strides = [1, 1]} : vector<16x3xf32> to vector<16x1xf32>
    %c1 = arith.constant 1 : index
    %c0_4 = arith.constant 0 : index
    %c0_5 = arith.constant 0 : index
    %9 = vector.load %arg1[%c1, %c0_4, %c0_5] : memref<3x16x384xbf16, #tpu.memory_space<vmem>>, vector<1x16x384xbf16>
    %10 = vector.shape_cast %9 : vector<1x16x384xbf16> to vector<16x384xbf16>
    %11 = arith.extf %10 : vector<16x384xbf16> to vector<16x384xf32>
    %12 = vector.broadcast %8 : vector<16x1xf32> to vector<16x384xf32>
    %13 = arith.mulf %12, %11 : vector<16x384xf32>
    %14 = arith.addf %7, %13 : vector<16x384xf32>
    %15 = vector.extract_strided_slice %1 {offsets = [0, 2], sizes = [16, 1], strides = [1, 1]} : vector<16x3xf32> to vector<16x1xf32>
    %c2 = arith.constant 2 : index
    %c0_6 = arith.constant 0 : index
    %c0_7 = arith.constant 0 : index
    %16 = vector.load %arg1[%c2, %c0_6, %c0_7] : memref<3x16x384xbf16, #tpu.memory_space<vmem>>, vector<1x16x384xbf16>
    %17 = vector.shape_cast %16 : vector<1x16x384xbf16> to vector<16x384xbf16>
    %18 = arith.extf %17 : vector<16x384xbf16> to vector<16x384xf32>
    %19 = vector.broadcast %15 : vector<16x1xf32> to vector<16x384xf32>
    %20 = arith.mulf %19, %18 : vector<16x384xf32>
    %21 = arith.addf %14, %20 : vector<16x384xf32>
    %c0_8 = arith.constant 0 : index
    %c0_9 = arith.constant 0 : index
    %22 = vector.load %arg3[%c0_8, %c0_9] : memref<16x1xf32, #tpu.memory_space<vmem>>, vector<16x1xf32>
    %23 = vector.broadcast %22 : vector<16x1xf32> to vector<16x384xf32>
    %24 = arith.mulf %21, %23 : vector<16x384xf32>
    %c0_10 = arith.constant 0 : index
    %c0_11 = arith.constant 0 : index
    %25 = vector.load %arg4[%c0_10, %c0_11] : memref<16x1xf32, #tpu.memory_space<vmem>>, vector<16x1xf32>
    %26 = vector.broadcast %25 : vector<16x1xf32> to vector<16x384xf32>
    %27 = arith.addf %24, %26 : vector<16x384xf32>
    %cst = arith.constant 0.000000e+00 : f32
    %cst_12 = arith.constant 1.500000e+01 : f32
    %28 = vector.broadcast %cst : f32 to vector<16x384xf32>
    %29 = arith.maximumf %28, %27 : vector<16x384xf32>
    %30 = vector.broadcast %cst_12 : f32 to vector<16x384xf32>
    %31 = arith.minimumf %30, %29 : vector<16x384xf32>
    %32 = math.roundeven %31 : vector<16x384xf32>
    %cst_13 = arith.constant 0.666666686 : f32
    %33 = vector.broadcast %cst_13 : f32 to vector<16x384xf32>
    %34 = arith.mulf %32, %33 : vector<16x384xf32>
    %c0_14 = arith.constant 0 : index
    %c0_15 = arith.constant 0 : index
    %35 = vector.load %arg5[%c0_14, %c0_15] : memref<16x384xf32, #tpu.memory_space<vmem>>, vector<16x384xf32>
    tpu.vector_store %arg5[%c0_14, %c0_15], %34 {strides = array<i32>} : memref<16x384xf32, #tpu.memory_space<vmem>>, vector<16x384xf32>,
    return
  }
  func.func @transform_0(%arg0: i32) -> (i32, i32, i32) {
    %c0_i32 = arith.constant 0 : i32
    %c0_i32_0 = arith.constant 0 : i32
    %c0_i32_1 = arith.constant 0 : i32
    return %c0_i32, %c0_i32_0, %arg0 : i32, i32, i32
  }
  func.func @transform_1(%arg0: i32) -> (i32, i32) {
    %c0_i32 = arith.constant 0 : i32
    %c0_i32_0 = arith.constant 0 : i32
    %c0_i32_1 = arith.constant 0 : i32
    return %c0_i32, %c0_i32_0 : i32, i32
  }
  func.func @transform_2(%arg0: i32) -> (i32, i32) {
    %c0_i32 = arith.constant 0 : i32
    %c0_i32_0 = arith.constant 0 : i32
    %c0_i32_1 = arith.constant 0 : i32
    return %c0_i32, %c0_i32_0 : i32, i32
  }
  func.func @transform_3(%arg0: i32) -> (i32, i32) {
    %c0_i32 = arith.constant 0 : i32
    %c0_i32_0 = arith.constant 0 : i32
    %c0_i32_1 = arith.constant 0 : i32
    return %c0_i32, %c0_i32_0 : i32, i32
  }
  func.func @transform_4(%arg0: i32) -> (i32, i32) {
    %c0_i32 = arith.constant 0 : i32
    %c0_i32_0 = arith.constant 0 : i32
    return %c0_i32, %arg0 : i32, i32
  }
}

</mosaic_0001>

<bundles_post_ra>
// kernel: forward.3
= control target key start
LH: loop header
LB: loop body
LE: loop exit
PB: predicated region body
PF: predicated region fallthrough
CT: control target
= control target key end

     0   :  { %v554_v0 = vmov 0   ;;  %vm279_vm0 = vcmask 588800   ;;  %vm283_vm1 = vcmask 1043456   ;;  %s745_s0 = inlined_call_operand.vmem [shape: bf16[200,384], index: 0, kind: input, shape index: {}]   ;;  %s746_s1 = inlined_call_operand.vmem [shape: bf16[16,200], index: 1, kind: input, shape index: {}]   ;;  %s747_s2 = inlined_call_operand.vmem [shape: f32[16,1], index: 2, kind: input, shape index: {}]   ;;  %s748_s3 = inlined_call_operand.vmem [shape: f32[16,1], index: 3, kind: input, shape index: {}]   ;;  %s749_s4 = inlined_call_operand.vmem [shape: f32[16,384], index: 4, kind: output, shape index: {}]  }
   0x1   :  { %336 = vmatprep.subr.bf16.mxu1 %v554_v0  ;;  %v500_v1 = vld [vmem:[%s745_s0 + $0x4] ss:$12 sps:$4 sm:$0xff]   ;;  %498 = vset.pattern.permute.xlu0 %v554_v0  ;;  %v502_v2 = vld [vmem:[%s745_s0 + $0x8] ss:$12 sps:$4 sm:$0xff]   ;;  %v503_v3 = vld [vmem:[%s745_s0] ss:$12 sps:$4 sm:$0xff]  }
   0x2   :  { %499 = vset.pattern.permute.xlu1 %v554_v0  ;;  %293 = vmatprep.subr.bf16.mxu0 %v500_v1  ;;  %v504_v4 = vld [vmem:[%s745_s0 + $0x1c] ss:$12 sps:$4 sm:$0xff]   ;;  %v506_v5 = vld [vmem:[%s745_s0 + $0x20] ss:$12 sps:$4 sm:$0xff]   ;;  %v507_v6 = vld [vmem:[%s745_s0 + $0x18] ss:$12 sps:$4 sm:$0xff]  }
   0x3   :  { %337 = vmatpush1.bf16.msra.mxu1 %v502_v2  ;;  %294 = vmatpush1.bf16.msra.mxu0 %v503_v3  ;;  %v508_v7 = vld [vmem:[%s745_s0 + $0x34] ss:$12 sps:$4 sm:$0xff]   ;;  %v510_v8 = vld [vmem:[%s745_s0 + $0x38] ss:$12 sps:$4 sm:$0xff]   ;;  %v511_v9 = vld [vmem:[%s745_s0 + $0x30] ss:$12 sps:$4 sm:$0xff]  }
   0x4   :  { %338 = vmatprep.subr.bf16.mxu1 %v554_v0  ;;  %295 = vmatprep.subr.bf16.mxu0 %v504_v4  ;;  %v512_v10 = vld [vmem:[%s745_s0 + $0x4c] ss:$12 sps:$4 sm:$0xff]   ;;  %v514_v11 = vld [vmem:[%s745_s0 + $0x50] ss:$12 sps:$4 sm:$0xff]   ;;  %v515_v12 = vld [vmem:[%s745_s0 + $0x48] ss:$12 sps:$4 sm:$0xff]  }
   0x5   :  { %v516_v13 = vld [vmem:[%s745_s0 + $0x64] ss:$12 sps:$4 sm:$0xff]   ;;  %v518_v14 = vld [vmem:[%s745_s0 + $0x68] ss:$12 sps:$4 sm:$0xff]   ;;  %v519_v15 = vld [vmem:[%s745_s0 + $0x60] ss:$12 sps:$4 sm:$0xff]  }
   0x6   :  { %v520_v16 = vld [vmem:[%s745_s0 + $0x7c] ss:$12 sps:$4 sm:$0xff]   ;;  %v522_v17 = vld [vmem:[%s745_s0 + $0x80] ss:$12 sps:$4 sm:$0xff]   ;;  %v523_v18 = vld [vmem:[%s745_s0 + $0x78] ss:$12 sps:$4 sm:$0xff]  }
   0x7   :  { %339 = vmatpush1.bf16.msra.mxu1 %v506_v5  ;;  %296 = vmatpush1.bf16.msra.mxu0 %v507_v6  ;;  %v524_v19 = vld [vmem:[%s745_s0 + $0x94] ss:$12 sps:$4 sm:$0xff]   ;;  %v526_v20 = vld [vmem:[%s745_s0 + $0x98] ss:$12 sps:$4 sm:$0xff]   ;;  %v527_v21 = vld [vmem:[%s745_s0 + $0x90] ss:$12 sps:$4 sm:$0xff]  }
   0x8   :  { %340 = vmatprep.subr.bf16.mxu1 %v554_v0  ;;  %297 = vmatprep.subr.bf16.mxu0 %v508_v7  ;;  %v528_v22 = vld [vmem:[%s745_s0 + $0xac] ss:$12 sps:$4 sm:$0xff]   ;;  %v530_v23 = vld [vmem:[%s745_s0 + $0xb0] ss:$12 sps:$4 sm:$0xff]   ;;  %v531_v24 = vld [vmem:[%s745_s0 + $0xa8] ss:$12 sps:$4 sm:$0xff]  }
   0x9   :  { %v532_v25 = vld [vmem:[%s745_s0 + $0xc4] ss:$12 sps:$4 sm:$0xff]   ;;  %v534_v28 = vld [vmem:[%s745_s0 + $0xc8] ss:$12 sps:$4 sm:$0xff]   ;;  %v535_v30 = vld [vmem:[%s745_s0 + $0xc0] ss:$12 sps:$4 sm:$0xff]  }
   0xa   :  { %v553_v26 = vld [vmem:[%s746_s1 + $0x4] ss:$8 sps:$4 sm:$0xff]   ;;  %v536_v32 = vld [vmem:[%s745_s0 + $0xdc] ss:$12 sps:$4 sm:$0xff]   ;;  %v540_v36 = vld [vmem:[%s745_s0 + $0xf4] ss:$12 sps:$4 sm:$0xff]  }
   0xb   :  { %341 = vmatpush1.bf16.msra.mxu1 %v510_v8  ;;  %298 = vmatpush1.bf16.msra.mxu0 %v511_v9  ;;  %v377_v27 = vld [vmem:[%s747_s2] sm:$0xff]  ;;  %v378_v31 = vld [vmem:[%s747_s2 + $0x8] sm:$0xff]  ;;  %v543_v38 = vld [vmem:[%s745_s0 + $0xf0] ss:$12 sps:$4 sm:$0xff]  }
   0xc   :  { %342 = vmatprep.subr.bf16.mxu1 %v554_v0  ;;  %299 = vmatprep.subr.bf16.mxu0 %v512_v10  ;;  %v395_v29 = vld [vmem:[%s748_s3] sm:$0xff]  ;;  %v396_v34 = vld [vmem:[%s748_s3 + $0x8] sm:$0xff]  ;;  %v546_v41 = vld [vmem:[%s745_s0 + $0x110] ss:$12 sps:$4 sm:$0xff]  }
   0xd   :  { %381 = vperm.xlu0 %498, %v377_v27   ;;  %490 = vmatprep.mubr.msk.bf16.mxu1 %vm279_vm0, %v553_v26  ;;  %v538_v33 = vld [vmem:[%s745_s0 + $0xe0] ss:$12 sps:$4 sm:$0xff]   ;;  %v539_v35 = vld [vmem:[%s745_s0 + $0xd8] ss:$12 sps:$4 sm:$0xff]   ;;  %v547_v42 = vld [vmem:[%s745_s0 + $0x108] ss:$12 sps:$4 sm:$0xff]  }
   0xe   :  { %489 = vmatprep.mubr.msk.bf16.mxu0 %vm279_vm0, %v553_v26  ;;  %399 = vperm.xlu1 %499, %v395_v29   ;;  %v542_v37 = vld [vmem:[%s745_s0 + $0xf8] ss:$12 sps:$4 sm:$0xff]   ;;  %v549_v43 = vld [vmem:[%s745_s0 + $0x128] ss:$0 sps:$4 sm:$0xff]  }
   0xf   :  { %343 = vmatpush1.bf16.msra.mxu1 %v514_v11  ;;  %300 = vmatpush1.bf16.msra.mxu0 %v515_v12  ;;  %v544_v39 = vld [vmem:[%s745_s0 + $0x10c] ss:$12 sps:$4 sm:$0xff]   ;;  %v68_v40 = vld [vmem:[%s745_s0 + $0x120] sm:$0xff]  ;;  %v291_v46 = vsel %vm283_vm1, %v549_v43, 0 }
  0x10   :  { %344 = vmatprep.subr.bf16.mxu1 %v554_v0  ;;  %301 = vmatprep.subr.bf16.mxu0 %v516_v13  ;;  %v486_v44 = vcombine.high %v68_v40, %v68_v40  ;;  %v485_v45 = vcombine.low %v68_v40, %v68_v40  ;;  %v551_v48 = vld [vmem:[%s746_s1] ss:$8 sps:$4 sm:$0xff]  }
  0x11   :  { %386 = vperm.xlu0 %498, %v378_v31  }
  0x12   :  { %404 = vperm.xlu1 %499, %v396_v34   ;;  %v285_v47 = vsel %vm283_vm1, %v485_v45, 0 }
  0x13   :  { %345 = vmatpush1.bf16.msra.mxu1 %v518_v14  ;;  %302 = vmatpush1.bf16.msra.mxu0 %v519_v15 }
  0x14   :  { %346 = vmatprep.subr.bf16.mxu1 %v554_v0  ;;  %303 = vmatprep.subr.bf16.mxu0 %v520_v16 }
  0x17   :  { %347 = vmatpush1.bf16.msra.mxu1 %v522_v17  ;;  %304 = vmatpush1.bf16.msra.mxu0 %v523_v18 }
  0x18   :  { %348 = vmatprep.subr.bf16.mxu1 %v554_v0  ;;  %305 = vmatprep.subr.bf16.mxu0 %v524_v19 }
  0x1b   :  { %349 = vmatpush1.bf16.msra.mxu1 %v526_v20  ;;  %306 = vmatpush1.bf16.msra.mxu0 %v527_v21 }
  0x1c   :  { %350 = vmatprep.subr.bf16.mxu1 %v554_v0  ;;  %307 = vmatprep.subr.bf16.mxu0 %v528_v22 }
  0x1f   :  { %351 = vmatpush1.bf16.msra.mxu1 %v530_v23  ;;  %308 = vmatpush1.bf16.msra.mxu0 %v531_v24 }
  0x20   :  { %352 = vmatprep.subr.bf16.mxu1 %v554_v0  ;;  %309 = vmatprep.subr.bf16.mxu0 %v532_v25 }
  0x23   :  { %353 = vmatpush1.bf16.msra.mxu1 %v534_v28  ;;  %310 = vmatpush1.bf16.msra.mxu0 %v535_v30 }
  0x24   :  { %354 = vmatprep.subr.bf16.mxu1 %v554_v0  ;;  %311 = vmatprep.subr.bf16.mxu0 %v536_v32 }
  0x27   :  { %355 = vmatpush1.bf16.msra.mxu1 %v538_v33  ;;  %312 = vmatpush1.bf16.msra.mxu0 %v539_v35 }
  0x28   :  { %356 = vmatprep.subr.bf16.mxu1 %v554_v0  ;;  %313 = vmatprep.subr.bf16.mxu0 %v540_v36 }
  0x2b   :  { %357 = vmatpush1.bf16.msra.mxu1 %v542_v37  ;;  %314 = vmatpush1.bf16.msra.mxu0 %v543_v38 }
  0x2c   :  { %358 = vmatprep.subr.bf16.mxu1 %v554_v0  ;;  %315 = vmatprep.subr.bf16.mxu0 %v544_v39 }
  0x2f   :  { %359 = vmatpush1.bf16.msra.mxu1 %v546_v41  ;;  %316 = vmatpush1.bf16.msra.mxu0 %v547_v42 }
  0x30   :  { %360 = vmatprep.subr.bf16.mxu1 %v554_v0  ;;  %488 = vmatprep.subr.msk.bf16.mxu0 %vm283_vm1, %v486_v44 }
  0x33   :  { %361 = vmatpush1.bf16.msra.mxu1 %v291_v46  ;;  %318 = vmatpush1.bf16.msra.mxu0 %v285_v47 }
  0x36   :  { %369 = vmatmul.mubr.bf16.vlgmr.msra.gmra.mrb[0].mxu1 %v551_v48  ;;  %326 = vmatmul.mubr.bf16.vlgmr.msra.gmra.mrb[0].mxu0 %v551_v48 }
  0x8c   :  { %v382_v49 = vpop.permute.xlu0 %381 }
  0x8d   :  { %v400_v50 = vpop.permute.xlu1 %399 }
  0x90   :  { %v387_v51 = vpop.permute.xlu0 %386 }
  0x91   :  { %v405_v1 = vpop.permute.xlu1 %404 }
 0x109   :  { %v370_v52 = vpop.f32.mrb[0].mxu1  ;;  %v327_v54 = vpop.f32.mrb[0].mxu0 }
 0x10a   :  { %v391_v53 = vmul.f32 %v382_v49, %v370_v52  ;;  %v372_v55 = vpop.f32.mrb[1].mxu1  ;;  %v389_v56 = vmul.f32 %v382_v49, %v327_v54  ;;  %v329_v57 = vpop.f32.mrb[1].mxu0 }
 0x10b   :  { %v373_v58 = vpop.f32.mrb[2].mxu1  ;;  %v390_v60 = vmul.f32 %v382_v49, %v329_v57  ;;  %v331_v62 = vpop.f32.mrb[2].mxu0 }
 0x10c   :  { %v409_v59 = vadd.f32 %v400_v50, %v391_v53  ;;  %v394_v61 = vmul.f32 %v387_v51, %v373_v58  ;;  %v375_v63 = vpop.f32.mrb[3].mxu1  ;;  %v407_v0 = vadd.f32 %v400_v50, %v389_v56  ;;  %v392_v2 = vmul.f32 %v387_v51, %v331_v62  ;;  %v333_v3 = vpop.f32.mrb[3].mxu0 }
 0x10d   :  { %v408_v5 = vadd.f32 %v400_v50, %v390_v60  ;;  %v393_v7 = vmul.f32 %v387_v51, %v333_v3 }
 0x10e   :  { %v415_v4 = vmax.f32 %v409_v59, 0.0  ;;  %v412_v6 = vadd.f32 %v405_v1, %v394_v61  ;;  %v413_v8 = vmax.f32 %v407_v0, 0.0  ;;  %v410_v9 = vadd.f32 %v405_v1, %v392_v2 }
 0x10f   :  { %v414_v11 = vmax.f32 %v408_v5, 0.0  ;;  %v411_v13 = vadd.f32 %v405_v1, %v393_v7 }
 0x110   :  { %v421_v10 = vmin.f32 %v415_v4, 15.0  ;;  %v418_v12 = vmax.f32 %v412_v6, 0.0  ;;  %v419_v14 = vmin.f32 %v413_v8, 15.0  ;;  %v416_v15 = vmax.f32 %v410_v9, 0.0 }
 0x111   :  { %v420_v17 = vmin.f32 %v414_v11, 15.0  ;;  %v417_v19 = vmax.f32 %v411_v13, 0.0 }
 0x112   :  { %v493_v16 = vround.rtne.f32 %v421_v10  ;;  %v424_v18 = vmin.f32 %v418_v12, 15.0  ;;  %v491_v20 = vround.rtne.f32 %v419_v14  ;;  %v422_v21 = vmin.f32 %v416_v15, 15.0 }
 0x113   :  { %v492_v23 = vround.rtne.f32 %v420_v17  ;;  %v423_v25 = vmin.f32 %v417_v19, 15.0 }
 0x114   :  { %v433_v22 = vmul.f32 0.6666667, %v493_v16  ;;  %v496_v24 = vround.rtne.f32 %v424_v18  ;;  %v431_v26 = vmul.f32 0.6666667, %v491_v20  ;;  %v494_v27 = vround.rtne.f32 %v422_v21 }
 0x115   :  { %v432_v28 = vmul.f32 0.6666667, %v492_v23  ;;  %v495_v30 = vround.rtne.f32 %v423_v25 }
 0x116   :  { %439 = vst [vmem:[%s749_s4 + $0x10] sm:$0xff] %v433_v22  ;;  %v436_v29 = vmul.f32 0.6666667, %v496_v24  ;;  %437 = vst [vmem:[%s749_s4] sm:$0xff] %v431_v26  ;;  %v434_v31 = vmul.f32 0.6666667, %v494_v27 }
 0x117   :  { %438 = vst [vmem:[%s749_s4 + $0x8] sm:$0xff] %v432_v28  ;;  %v435_v32 = vmul.f32 0.6666667, %v495_v30 }
 0x118   :  { %442 = vst [vmem:[%s749_s4 + $0x28] sm:$0xff] %v436_v29  ;;  %440 = vst [vmem:[%s749_s4 + $0x18] sm:$0xff] %v434_v31 }
 0x119   :  { %441 = vst [vmem:[%s749_s4 + $0x20] sm:$0xff] %v435_v32 }

// kernel: forward.4
= control target key start
LH: loop header
LB: loop body
LE: loop exit
PB: predicated region body
PF: predicated region fallthrough
CT: control target
= control target key end

     0   :  { %vm124_vm0 = vcmask 1044480   ;;  %vm117_vm1 = vcmask 39936   ;;  %v533_v3 = vmov 0.0   ;;  %v534_v4 = vmov 0   ;;  %s652_s4 = inlined_call_operand.vmem [shape: f32[5,384], index: 4, kind: input, shape index: {}]   ;;  %s653_s2 = inlined_call_operand.vmem [shape: f32[16,5], index: 2, kind: input, shape index: {}]   ;;  %s654_s1 = inlined_call_operand.vmem [shape: bf16[16,3], index: 1, kind: input, shape index: {}]   ;;  %s655_s3 = inlined_call_operand.vmem [shape: f32[16,5], index: 3, kind: input, shape index: {}]   ;;  %s656_s0 = inlined_call_operand.vmem [shape: bf16[3,16,384], index: 0, kind: input, shape index: {}]   ;;  %s657_s5 = inlined_call_operand.vmem [shape: f32[16,384], index: 5, kind: output, shape index: {}]  }
   0x1   :  { %v115_v0 = vld [vmem:[%s652_s4 + $0x8] sm:$0x1f]  ;;  %v116_v1 = vld [vmem:[%s652_s4 + $0x10] sm:$0x1f]  ;;  %v114_v2 = vld [vmem:[%s652_s4] sm:$0x1f]  ;;  %198 = vmatprep.mubr.f32.mxu0 %v533_v3  ;;  %514 = vset.pattern.permute.xlu0 %v534_v4 }
   0x2   :  { %476 = vmatprep.subr.msk.mxu0 %vm124_vm0, %v115_v0  ;;  %500 = vmatprep.subr.msk.mxu1 %vm124_vm0, %v116_v1  ;;  %v112_v5 = vld [vmem:[%s653_s2] sm:$0xff]  ;;  %v113_v6 = vld [vmem:[%s653_s2 + $0x8] sm:$0xff]  ;;  %v535_v13 = vmov 2   ;;  %v536_v14 = vmov 1   ;;  %v468_v18 = vld [vmem:[%s656_s0 + $0x18] sm:$0xff] }
   0x3   :  { %477 = vmatpush1.msk.msra.mxu0 %vm124_vm0, %v114_v2  ;;  %501 = vmatpush3.msk.msra.mxu1 %vm124_vm0, %v116_v1  ;;  %v491_v7 = vld [vmem:[%s654_s1] sm:$0xff]   ;;  %v287_v12 = vld [vmem:[%s655_s3 + $0x8] sm:$0xff]  ;;  %v55_v24 = vunpack.c.l.bf16 %v468_v18  ;;  %v56_v26 = vunpack.c.h.bf16 %v468_v18  ;;  %v472_v28 = vld [vmem:[%s656_s0 + $0x30] sm:$0xff] }
   0x4   :  { %502 = vmatprep.mubr.msk.f32.mxu1 %vm117_vm1, %v112_v5  ;;  %478 = vmatmul.mubr.msk.f32.vlgmr.msra.gmra.mrb[0].mxu0 %vm117_vm1, %v112_v5  ;;  %v492_v8 = vunpack.c.l.bf16 %v491_v7  ;;  %v493_v9 = vunpack.c.h.bf16 %v491_v7  ;;  %v286_v10 = vld [vmem:[%s655_s3] sm:$0xff]  ;;  %v25_v19 = vld [vmem:[%s656_s0 + $0x8] ss:$12 sps:$4 sm:$0xff]   ;;  %v26_v29 = vld [vmem:[%s656_s0 + $0xc] sm:$0xff]  ;;  %v86_v41 = vunpack.c.l.bf16 %v472_v28  ;;  %v87_v45 = vunpack.c.h.bf16 %v472_v28 }
   0x5   :  { %503 = vmatmul.mubr.msk.f32.vlgmr.msra.gmra.mrb[0].mxu1 %vm117_vm1, %v113_v6  ;;  %483 = vmatprep.subr.msk.mxu1 %vm124_vm0, %v115_v0  ;;  %v24_v16 = vld [vmem:[%s656_s0] sm:$0xff]  ;;  %v30_v30 = vunpack.c.l.bf16 %v25_v19  ;;  %v33_v31 = vunpack.c.h.bf16 %v25_v19  ;;  %v31_v42 = vunpack.c.l.bf16 %v26_v29  ;;  %v32_v46 = vunpack.c.h.bf16 %v26_v29 }
   0x6   :  { %505 = vmatprep.subr.msk.mxu0 %vm124_vm0, %v116_v1  ;;  %484 = vmatpush1.msk.msra.mxu1 %vm124_vm0, %v114_v2  ;;  %v515_v11 = vpack.i.bf16 %v493_v9, %v492_v8  ;;  %v28_v21 = vunpack.c.l.bf16 %v24_v16  ;;  %v469_v23 = vld [vmem:[%s656_s0 + $0x20] ss:$12 sps:$4 sm:$0xff]   ;;  %v29_v25 = vunpack.c.h.bf16 %v24_v16  ;;  %v470_v34 = vld [vmem:[%s656_s0 + $0x24] sm:$0xff] }
   0x7   :  { %506 = vmatpush3.msk.msra.mxu0 %vm124_vm0, %v116_v1  ;;  %204 = vmatprep.mubr.f32.mxu0 %v533_v3  ;;  %v57_v35 = vunpack.c.l.bf16 %v469_v23  ;;  %v60_v36 = vunpack.c.h.bf16 %v469_v23  ;;  %v475_v37 = vld [vmem:[%s656_s0 + $0x38] ss:$12 sps:$4 sm:$0xff]   ;;  %v58_v47 = vunpack.c.l.bf16 %v470_v34  ;;  %v59_v48 = vunpack.c.h.bf16 %v470_v34  ;;  %v474_v54 = vld [vmem:[%s656_s0 + $0x3c] sm:$0xff] }
   0x8   :  { %358 = vmatprep.mubr.f32.mxu1 %v533_v3  ;;  %479 = vmatmul.mubr.msk.f32.gmra.mrb[2].mxu0 %vm117_vm1, %v113_v6  ;;  %v91_v49 = vunpack.c.h.bf16 %v475_v37  ;;  %v88_v53 = vunpack.c.l.bf16 %v475_v37  ;;  %v89_v63 = vunpack.c.l.bf16 %v474_v54  ;;  %v90_v0 = vunpack.c.h.bf16 %v474_v54 }
   0x9   :  { %485 = vmatmul.mubr.msk.f32.vlgmr.msra.gmra.mrb[2].mxu1 %vm117_vm1, %v286_v10  ;;  %507 = vmatprep.mubr.msk.f32.mxu0 %vm117_vm1, %v286_v10 }
   0xa   :  { %364 = vmatprep.mubr.f32.mxu1 %v533_v3  ;;  %516 = vperm.xlu0 %514, %v515_v11  }
   0xb   :  { %526 = vset.pattern.permute.xlu1 %v535_v13 }
   0xc   :  { %508 = vmatmul.mubr.msk.f32.vlgmr.msra.gmra.mrb[4].mxu0 %vm117_vm1, %v287_v12  ;;  %528 = vperm.xlu1 %526, %v515_v11  }
   0xd   :  { %486 = vmatmul.mubr.msk.f32.gmra.mrb[4].mxu1 %vm117_vm1, %v287_v12 }
   0xe   :  { %520 = vset.pattern.permute.xlu0 %v536_v14 }
   0xf   :  { %522 = vperm.xlu0 %520, %v515_v11  }
  0x13   :  { %532 = vset.pattern.permute.xlu0 %v535_v13 }
  0x89   :  { %v517_v15 = vpop.permute.xlu0 %516 }
  0x8a   :  { %v518_v20 = vunpack.i.l.bf16 %v517_v15  ;;  %v519_v32 = vunpack.i.h.bf16 %v517_v15 }
  0x8b   :  { %v529_v27 = vpop.permute.xlu1 %528 }
  0x8c   :  { %v44_v38 = vmul.f32 %v518_v20, %v28_v21  ;;  %v530_v40 = vunpack.i.l.bf16 %v529_v27  ;;  %v45_v43 = vmul.f32 %v518_v20, %v29_v25  ;;  %v49_v50 = vmul.f32 %v519_v32, %v33_v31 }
  0x8d   :  { %v531_v52 = vunpack.i.h.bf16 %v529_v27  ;;  %v46_v55 = vmul.f32 %v518_v20, %v30_v30  ;;  %v47_v61 = vmul.f32 %v519_v32, %v31_v42  ;;  %v48_v1 = vmul.f32 %v519_v32, %v32_v46 }
  0x8e   :  { %v523_v17 = vpop.permute.xlu0 %522  ;;  %v100_v58 = vmul.f32 %v530_v40, %v86_v41  ;;  %v101_v60 = vmul.f32 %v530_v40, %v87_v45  ;;  %v102_v8 = vmul.f32 %v530_v40, %v88_v53 }
  0x8f   :  { %v524_v22 = vunpack.i.l.bf16 %v523_v17  ;;  %v525_v33 = vunpack.i.h.bf16 %v523_v17  ;;  %v105_v4 = vmul.f32 %v531_v52, %v91_v49  ;;  %v103_v14 = vmul.f32 %v531_v52, %v89_v63 }
  0x90   :  { %v104_v17 = vmul.f32 %v531_v52, %v90_v0 }
  0x91   :  { %v69_v39 = vmul.f32 %v524_v22, %v55_v24  ;;  %v70_v44 = vmul.f32 %v524_v22, %v56_v26  ;;  %v74_v51 = vmul.f32 %v525_v33, %v60_v36  ;;  %v71_v56 = vmul.f32 %v524_v22, %v57_v35 }
  0x92   :  { %v72_v62 = vmul.f32 %v525_v33, %v58_v47  ;;  %v73_v2 = vmul.f32 %v525_v33, %v59_v48 }
  0x93   :  { %v75_v57 = vadd.f32 %v69_v39, %v44_v38  ;;  %v76_v59 = vadd.f32 %v70_v44, %v45_v43  ;;  %v80_v3 = vadd.f32 %v74_v51, %v49_v50  ;;  %v77_v7 = vadd.f32 %v71_v56, %v46_v55 }
  0x94   :  { %v78_v13 = vadd.f32 %v72_v62, %v47_v61  ;;  %v79_v16 = vadd.f32 %v73_v2, %v48_v1 }
  0x95   :  { %v106_v5 = vadd.f32 %v100_v58, %v75_v57  ;;  %v107_v10 = vadd.f32 %v101_v60, %v76_v59  ;;  %v111_v15 = vadd.f32 %v105_v4, %v80_v3  ;;  %v108_v19 = vadd.f32 %v102_v8, %v77_v7 }
  0x96   :  { %v109_v24 = vadd.f32 %v103_v14, %v78_v13  ;;  %v110_v28 = vadd.f32 %v104_v17, %v79_v16 }
  0xd7   :  { %v200_v6 = vpop.f32.mrb[0].mxu0 }
  0xd8   :  { %v504_v9 = vpop.f32.mrb[0].mxu1  ;;  %v202_v11 = vpop.f32.mrb[1].mxu0  ;;  %v446_v18 = vmul.f32 %v200_v6, %v106_v5 }
  0xd9   :  { %v277_v12 = vpop.f32.mrb[1].mxu1  ;;  %v447_v21 = vmul.f32 %v202_v11, %v107_v10  ;;  %v451_v27 = vmul.f32 %v504_v9, %v111_v15 }
  0xda   :  { %v448_v30 = vmul.f32 %v277_v12, %v108_v19 }
  0xdb   :  { %v206_v20 = vpop.f32.mrb[2].mxu0 }
  0xdc   :  { %v360_v22 = vpop.f32.mrb[2].mxu1  ;;  %v208_v23 = vpop.f32.mrb[3].mxu0  ;;  %v449_v31 = vmul.f32 %v206_v20, %v109_v24 }
  0xdd   :  { %v452_v25 = vadd.f32 %v446_v18, %v360_v22  ;;  %v362_v26 = vpop.f32.mrb[3].mxu1  ;;  %v450_v33 = vmul.f32 %v208_v23, %v110_v28 }
  0xde   :  { %v453_v29 = vadd.f32 %v447_v21, %v362_v26 }
  0xdf   :  { %458 = vst [vmem:[%s657_s5] sm:$0xff] %v452_v25  ;;  %v509_v32 = vpop.f32.mrb[4].mxu0 }
  0xe0   :  { %459 = vst [vmem:[%s657_s5 + $0x8] sm:$0xff] %v453_v29  ;;  %v366_v34 = vpop.f32.mrb[4].mxu1  ;;  %v457_v35 = vadd.f32 %v509_v32, %v451_v27  ;;  %v437_v36 = vpop.f32.mrb[5].mxu0 }
  0xe1   :  { %v455_v37 = vadd.f32 %v449_v31, %v366_v34  ;;  %v368_v38 = vpop.f32.mrb[5].mxu1  ;;  %v454_v39 = vadd.f32 %v448_v30, %v437_v36 }
  0xe2   :  { %463 = vst [vmem:[%s657_s5 + $0x28] sm:$0xff] %v457_v35  ;;  %v456_v40 = vadd.f32 %v450_v33, %v368_v38 }
  0xe3   :  { %461 = vst [vmem:[%s657_s5 + $0x18] sm:$0xff] %v455_v37  ;;  %460 = vst [vmem:[%s657_s5 + $0x10] sm:$0xff] %v454_v39 }
  0xe4   :  { %462 = vst [vmem:[%s657_s5 + $0x20] sm:$0xff] %v456_v40 }

// kernel: forward.5
= control target key start
LH: loop header
LB: loop body
LE: loop exit
PB: predicated region body
PF: predicated region fallthrough
CT: control target
= control target key end

     0   :  { %v221_v0 = vmov 0   ;;  %v222_v6 = vmov 2   ;;  %v223_v8 = vmov 1   ;;  %s314_s2 = inlined_call_operand.vmem [shape: f32[16,1], index: 2, kind: input, shape index: {}]   ;;  %s315_s1 = inlined_call_operand.vmem [shape: bf16[16,3], index: 1, kind: input, shape index: {}]   ;;  %s316_s3 = inlined_call_operand.vmem [shape: f32[16,1], index: 3, kind: input, shape index: {}]   ;;  %s317_s0 = inlined_call_operand.vmem [shape: bf16[3,16,384], index: 0, kind: input, shape index: {}]   ;;  %s318_s4 = inlined_call_operand.vmem [shape: f32[16,384], index: 4, kind: output, shape index: {}]  }
   0x1   :  { %212 = vset.pattern.permute.xlu1 %v221_v0  ;;  %v109_v1 = vld [vmem:[%s314_s2] sm:$0xff]  ;;  %200 = vset.pattern.permute.xlu0 %v221_v0  ;;  %v110_v7 = vld [vmem:[%s314_s2 + $0x8] sm:$0xff]  ;;  %v183_v15 = vld [vmem:[%s317_s0 + $0x30] sm:$0xff] }
   0x2   :  { %v188_v2 = vld [vmem:[%s315_s1] sm:$0xff]   ;;  %113 = vperm.xlu1 %212, %v109_v1   ;;  %v128_v9 = vld [vmem:[%s316_s3 + $0x8] sm:$0xff]  ;;  %v179_v25 = vld [vmem:[%s317_s0 + $0x18] sm:$0xff]  ;;  %v83_v28 = vunpack.c.l.bf16 %v183_v15  ;;  %v84_v29 = vunpack.c.h.bf16 %v183_v15 }
   0x3   :  { %v189_v3 = vunpack.c.l.bf16 %v188_v2  ;;  %v190_v4 = vunpack.c.h.bf16 %v188_v2  ;;  %v127_v10 = vld [vmem:[%s316_s3] sm:$0xff]  ;;  %v22_v13 = vld [vmem:[%s317_s0 + $0x8] ss:$12 sps:$4 sm:$0xff]   ;;  %v23_v14 = vld [vmem:[%s317_s0 + $0xc] sm:$0xff]  ;;  %v52_v39 = vunpack.c.l.bf16 %v179_v25  ;;  %v53_v40 = vunpack.c.h.bf16 %v179_v25 }
   0x4   :  { %v21_v12 = vld [vmem:[%s317_s0] sm:$0xff]  ;;  %v27_v21 = vunpack.c.l.bf16 %v22_v13  ;;  %v28_v22 = vunpack.c.l.bf16 %v23_v14  ;;  %v29_v23 = vunpack.c.h.bf16 %v23_v14  ;;  %v30_v24 = vunpack.c.h.bf16 %v22_v13 }
   0x5   :  { %v201_v5 = vpack.i.bf16 %v190_v4, %v189_v3  ;;  %v25_v16 = vunpack.c.l.bf16 %v21_v12  ;;  %v26_v17 = vunpack.c.h.bf16 %v21_v12  ;;  %v184_v18 = vld [vmem:[%s317_s0 + $0x38] ss:$12 sps:$4 sm:$0xff]   ;;  %v185_v19 = vld [vmem:[%s317_s0 + $0x3c] sm:$0xff] }
   0x6   :  { %213 = vset.pattern.permute.xlu1 %v222_v6  ;;  %v180_v30 = vld [vmem:[%s317_s0 + $0x20] ss:$12 sps:$4 sm:$0xff]   ;;  %v181_v31 = vld [vmem:[%s317_s0 + $0x24] sm:$0xff]  ;;  %v85_v33 = vunpack.c.l.bf16 %v184_v18  ;;  %v86_v34 = vunpack.c.l.bf16 %v185_v19  ;;  %v87_v35 = vunpack.c.h.bf16 %v185_v19  ;;  %v88_v36 = vunpack.c.h.bf16 %v184_v18 }
   0x7   :  { %202 = vperm.xlu0 %200, %v201_v5   ;;  %215 = vperm.xlu1 %213, %v201_v5   ;;  %v54_v41 = vunpack.c.l.bf16 %v180_v30  ;;  %v55_v42 = vunpack.c.l.bf16 %v181_v31  ;;  %v56_v43 = vunpack.c.h.bf16 %v181_v31  ;;  %v57_v44 = vunpack.c.h.bf16 %v180_v30 }
   0xb   :  { %206 = vset.pattern.permute.xlu0 %v223_v8  ;;  %219 = vset.pattern.permute.xlu1 %v221_v0 }
   0xc   :  { %208 = vperm.xlu0 %206, %v201_v5   ;;  %118 = vperm.xlu1 %219, %v110_v7  }
  0x10   :  { %220 = vset.pattern.permute.xlu0 %v221_v0  ;;  %136 = vperm.xlu1 %219, %v128_v9  }
  0x11   :  { %131 = vperm.xlu0 %220, %v127_v10  }
  0x81   :  { %v264_v11 = vpop.permute.xlu1 %113 }
  0x86   :  { %v203_v20 = vpop.permute.xlu0 %202  ;;  %v216_v32 = vpop.permute.xlu1 %215 }
  0x87   :  { %v205_v26 = vunpack.i.h.bf16 %v203_v20  ;;  %v204_v27 = vunpack.i.l.bf16 %v203_v20  ;;  %v218_v37 = vunpack.i.h.bf16 %v216_v32  ;;  %v217_v38 = vunpack.i.l.bf16 %v216_v32 }
  0x89   :  { %v41_v45 = vmul.f32 %v204_v27, %v25_v16  ;;  %v42_v46 = vmul.f32 %v204_v27, %v26_v17  ;;  %v43_v47 = vmul.f32 %v204_v27, %v27_v21  ;;  %v44_v48 = vmul.f32 %v205_v26, %v28_v22 }
  0x8a   :  { %v45_v50 = vmul.f32 %v205_v26, %v29_v23  ;;  %v46_v51 = vmul.f32 %v205_v26, %v30_v24  ;;  %v97_v54 = vmul.f32 %v217_v38, %v83_v28  ;;  %v98_v55 = vmul.f32 %v217_v38, %v84_v29 }
  0x8b   :  { %v209_v49 = vpop.permute.xlu0 %208  ;;  %v99_v56 = vmul.f32 %v217_v38, %v85_v33  ;;  %v100_v57 = vmul.f32 %v218_v37, %v86_v34  ;;  %v101_v62 = vmul.f32 %v218_v37, %v87_v35  ;;  %v102_v63 = vmul.f32 %v218_v37, %v88_v36  ;;  %v119_v2 = vpop.permute.xlu1 %118 }
  0x8c   :  { %v211_v52 = vunpack.i.h.bf16 %v209_v49  ;;  %v210_v53 = vunpack.i.l.bf16 %v209_v49 }
  0x8e   :  { %v66_v58 = vmul.f32 %v210_v53, %v52_v39  ;;  %v67_v59 = vmul.f32 %v210_v53, %v53_v40  ;;  %v68_v60 = vmul.f32 %v210_v53, %v54_v41  ;;  %v69_v61 = vmul.f32 %v211_v52, %v55_v42 }
  0x8f   :  { %v70_v0 = vmul.f32 %v211_v52, %v56_v43  ;;  %v71_v1 = vmul.f32 %v211_v52, %v57_v44  ;;  %v137_v23 = vpop.permute.xlu1 %136 }
  0x90   :  { %v75_v3 = vadd.f32 %v69_v61, %v44_v48  ;;  %v72_v4 = vadd.f32 %v66_v58, %v41_v45  ;;  %v73_v5 = vadd.f32 %v67_v59, %v42_v46  ;;  %v74_v6 = vadd.f32 %v68_v60, %v43_v47  ;;  %v132_v16 = vpop.permute.xlu0 %131 }
  0x91   :  { %v76_v7 = vadd.f32 %v70_v0, %v45_v50  ;;  %v77_v8 = vadd.f32 %v71_v1, %v46_v51 }
  0x92   :  { %v106_v9 = vadd.f32 %v100_v57, %v75_v3  ;;  %v103_v10 = vadd.f32 %v97_v54, %v72_v4  ;;  %v104_v12 = vadd.f32 %v98_v55, %v73_v5  ;;  %v105_v13 = vadd.f32 %v99_v56, %v74_v6 }
  0x93   :  { %v107_v14 = vadd.f32 %v101_v62, %v76_v7  ;;  %v108_v15 = vadd.f32 %v102_v63, %v77_v8 }
  0x94   :  { %v124_v17 = vmul.f32 %v119_v2, %v106_v9  ;;  %v121_v18 = vmul.f32 %v264_v11, %v103_v10  ;;  %v122_v19 = vmul.f32 %v264_v11, %v104_v12  ;;  %v123_v20 = vmul.f32 %v264_v11, %v105_v13 }
  0x95   :  { %v125_v21 = vmul.f32 %v119_v2, %v107_v14  ;;  %v126_v22 = vmul.f32 %v119_v2, %v108_v15 }
  0x96   :  { %v142_v24 = vadd.f32 %v137_v23, %v124_v17  ;;  %v139_v25 = vadd.f32 %v132_v16, %v121_v18  ;;  %v140_v26 = vadd.f32 %v132_v16, %v122_v19  ;;  %v141_v27 = vadd.f32 %v132_v16, %v123_v20 }
  0x97   :  { %v143_v28 = vadd.f32 %v137_v23, %v125_v21  ;;  %v144_v29 = vadd.f32 %v137_v23, %v126_v22 }
  0x98   :  { %v148_v30 = vmax.f32 %v142_v24, 0.0  ;;  %v145_v31 = vmax.f32 %v139_v25, 0.0  ;;  %v146_v32 = vmax.f32 %v140_v26, 0.0  ;;  %v147_v33 = vmax.f32 %v141_v27, 0.0 }
  0x99   :  { %v149_v34 = vmax.f32 %v143_v28, 0.0  ;;  %v150_v35 = vmax.f32 %v144_v29, 0.0 }
  0x9a   :  { %v154_v36 = vmin.f32 %v148_v30, 15.0  ;;  %v151_v37 = vmin.f32 %v145_v31, 15.0  ;;  %v152_v38 = vmin.f32 %v146_v32, 15.0  ;;  %v153_v39 = vmin.f32 %v147_v33, 15.0 }
  0x9b   :  { %v155_v11 = vmin.f32 %v149_v34, 15.0  ;;  %v156_v40 = vmin.f32 %v150_v35, 15.0 }
  0x9c   :  { %v194_v41 = vround.rtne.f32 %v154_v36  ;;  %v191_v42 = vround.rtne.f32 %v151_v37  ;;  %v192_v43 = vround.rtne.f32 %v152_v38  ;;  %v193_v44 = vround.rtne.f32 %v153_v39 }
  0x9d   :  { %v195_v45 = vround.rtne.f32 %v155_v11  ;;  %v196_v46 = vround.rtne.f32 %v156_v40 }
  0x9e   :  { %v166_v47 = vmul.f32 0.6666667, %v194_v41  ;;  %v163_v48 = vmul.f32 0.6666667, %v191_v42  ;;  %v164_v49 = vmul.f32 0.6666667, %v192_v43 }
  0x9f   :  { %v167_v50 = vmul.f32 0.6666667, %v195_v45  ;;  %v168_v51 = vmul.f32 0.6666667, %v196_v46  ;;  %v165_v52 = vmul.f32 0.6666667, %v193_v44 }
  0xa0   :  { %172 = vst [vmem:[%s318_s4 + $0x18] sm:$0xff] %v166_v47  ;;  %169 = vst [vmem:[%s318_s4] sm:$0xff] %v163_v48 }
  0xa1   :  { %170 = vst [vmem:[%s318_s4 + $0x8] sm:$0xff] %v164_v49  ;;  %173 = vst [vmem:[%s318_s4 + $0x20] sm:$0xff] %v167_v50 }
  0xa2   :  { %174 = vst [vmem:[%s318_s4 + $0x28] sm:$0xff] %v168_v51  ;;  %171 = vst [vmem:[%s318_s4 + $0x10] sm:$0xff] %v165_v52 }

</bundles_post_ra>
